<compile_context>
chip_gen: v6e
topology: v6e:2x2x1
jax: 0.10.0
libtpu: 0.0.40
codegen_flags: <defaults>
</compile_context>

<pallas_src>
import jax
import jax.numpy as jnp
from jax.experimental import pallas as pl
from jax.experimental.pallas import tpu as pltpu

IMG_SIZE = 28
Z_DIM = 100
Z_PAD = 128                        # zero-padded latent dim -> lane-dense MXU K
H1 = 128
H2 = 256
IMG_DIM = 1 * IMG_SIZE * IMG_SIZE  # 784
IMG_PAD = 896                      # 7 * 128 -> lane-dense output stores


def _leaky_relu(x, slope=0.2):
    return jnp.where(x > 0, x, slope * x)


def _round_up(x, m):
    return (x + m - 1) // m * m


def _choose_tiling(B, tile_b):
    """Pick (grid, tile, padded_batch) with minimal padding and >=2 steps for
    mid/large batches (v7x megacore)."""
    grid = max(1, pl.cdiv(B, tile_b))
    if grid == 1 and B >= 256:
        grid = 2
    tile = _round_up(pl.cdiv(B, grid), 8)
    return grid, tile, grid * tile


def generator_kernel(z_ref, w1_ref, b1_ref, w2_ref, b2_ref, w3_ref, b3_ref,
                     out_ref):
    # bf16 matmuls on the MXU with f32 accumulation; elementwise ops in f32.
    h = jnp.dot(z_ref[...], w1_ref[...],
                preferred_element_type=jnp.float32) + b1_ref[...]
    h = _leaky_relu(h).astype(jnp.bfloat16)
    h = jnp.dot(h, w2_ref[...],
                preferred_element_type=jnp.float32) + b2_ref[...]
    h = _leaky_relu(h).astype(jnp.bfloat16)
    h = jnp.dot(h, w3_ref[...],
                preferred_element_type=jnp.float32) + b3_ref[...]
    out_ref[...] = jnp.tanh(h).astype(out_ref.dtype)  # bf16 store


def generator_forward(z, params, *, tile_b=1024):
    """z: (B, Z_DIM) float32.  Returns (B, IMG_DIM) bfloat16."""
    w1, b1, w2, b2, w3, b3 = params
    B = z.shape[0]

    # bf16 weights (halve DMA + VMEM); biases stay f32.
    w1 = w1.astype(jnp.bfloat16)
    w2 = w2.astype(jnp.bfloat16)
    w3 = w3.astype(jnp.bfloat16)

    # Zero-pad latent dim 100 -> 128 (lane-dense K); matching zero rows in w1.
    w1 = jnp.pad(w1, ((0, Z_PAD - Z_DIM), (0, 0)))
    # Pad the output feature dim to a multiple of 128 for unmasked stores.
    w3 = jnp.pad(w3, ((0, 0), (0, IMG_PAD - IMG_DIM)))
    b3 = jnp.pad(b3, ((0, 0), (0, IMG_PAD - IMG_DIM)))

    # Batch tiling: minimal padding, >=2 grid steps for B >= 256 (megacore).
    grid_n, tile, B_pad = _choose_tiling(B, tile_b)
    z = z.astype(jnp.bfloat16)
    z = jnp.pad(z, ((0, B_pad - B), (0, Z_PAD - Z_DIM)))
    grid = (grid_n,)

    full = lambda shape: pl.BlockSpec(shape, lambda i: (0,) * len(shape))

    flops = 2 * B_pad * (Z_PAD * H1 + H1 * H2 + H2 * IMG_PAD)
    bytes_accessed = (z.size * 2
                      + (w1.size + w2.size + w3.size) * 2
                      + (b1.size + b2.size + b3.size) * 4
                      + B_pad * IMG_PAD * 2)
    cost = pl.CostEstimate(flops=flops,
                           transcendentals=B_pad * IMG_PAD,
                           bytes_accessed=bytes_accessed)

    out = pl.pallas_call(
        generator_kernel,
        out_shape=jax.ShapeDtypeStruct((B_pad, IMG_PAD), jnp.bfloat16),
        grid_spec=pltpu.PrefetchScalarGridSpec(
            num_scalar_prefetch=0,
            grid=grid,
            in_specs=[
                pl.BlockSpec((tile, Z_PAD), lambda i: (i, 0)),
                full((Z_PAD, H1)),
                full((1, H1)),
                full((H1, H2)),
                full((1, H2)),
                full((H2, IMG_PAD)),
                full((1, IMG_PAD)),
            ],
            out_specs=pl.BlockSpec((tile, IMG_PAD), lambda i: (i, 0)),
        ),
        compiler_params=pltpu.CompilerParams(
            dimension_semantics=("parallel",)),
        cost_estimate=cost,
    )(z, w1, b1, w2, b2, w3, b3)

    # Un-pad on the bf16 output (half the copy cost of the old f32 slice).
    return out[:B, :IMG_DIM]


def init_params(key):
    """Deterministic synthetic init (uniform, roughly PyTorch Linear scale)."""
    ks = jax.random.split(key, 6)

    def lin(kw, kb, fan_in, fan_out):
        bound = 1.0 / jnp.sqrt(fan_in)
        w = jax.random.uniform(kw, (fan_in, fan_out), jnp.float32,
                               minval=-bound, maxval=bound)
        b = jax.random.uniform(kb, (1, fan_out), jnp.float32,
                               minval=-bound, maxval=bound)
        return w, b

    w1, b1 = lin(ks[0], ks[1], Z_DIM, H1)
    w2, b2 = lin(ks[2], ks[3], H1, H2)
    w3, b3 = lin(ks[4], ks[5], H2, IMG_DIM)
    return (w1, b1, w2, b2, w3, b3)


def reference_forward_f32(z, params):
    w1, b1, w2, b2, w3, b3 = params
    h = _leaky_relu(z @ w1 + b1)
    h = _leaky_relu(h @ w2 + b2)
    return jnp.tanh(h @ w3 + b3)


def reference_forward_bf16(z, params):
    # Same bf16-matmul / f32-accumulate arithmetic as the kernel (tanh in f32).
    w1, b1, w2, b2, w3, b3 = params
    bf = jnp.bfloat16
    h = jnp.dot(z.astype(bf), w1.astype(bf),
                preferred_element_type=jnp.float32) + b1
    h = _leaky_relu(h)
    h = jnp.dot(h.astype(bf), w2.astype(bf),
                preferred_element_type=jnp.float32) + b2
    h = _leaky_relu(h)
    h = jnp.dot(h.astype(bf), w3.astype(bf),
                preferred_element_type=jnp.float32) + b3
    return jnp.tanh(h)


if __name__ == "__main__":
    key = jax.random.PRNGKey(0)
    k_params, k_z = jax.random.split(key)

    params = init_params(k_params)
    batch = 16
    z = jax.random.normal(k_z, (batch, Z_DIM), dtype=jnp.float32)

    out = generator_forward(z, params)
    out = jax.block_until_ready(out)

    assert out.shape == (batch, IMG_DIM)
    assert out.dtype == jnp.bfloat16

    out_f32 = out.astype(jnp.float32)
    ref_bf16 = reference_forward_bf16(z, params)
    ref_f32 = reference_forward_f32(z, params)

    assert jnp.allclose(out_f32, ref_bf16, atol=2e-2, rtol=0), \
        "mismatch vs bf16-matmul reference"
    assert jnp.allclose(out_f32, ref_f32, atol=5e-2, rtol=0), \
        "mismatch vs f32 reference"

    print("KERNEL_OK")
</pallas_src>

<mosaic_0001>
module attributes {stable_mosaic.version = 11 : i64} {
  func.func @generator_kernel(%arg0: i32, %arg1: memref<16x128xbf16, #tpu.memory_space<vmem>>, %arg2: memref<128x128xbf16, #tpu.memory_space<vmem>>, %arg3: memref<1x128xf32, #tpu.memory_space<vmem>>, %arg4: memref<128x256xbf16, #tpu.memory_space<vmem>>, %arg5: memref<1x256xf32, #tpu.memory_space<vmem>>, %arg6: memref<256x896xbf16, #tpu.memory_space<vmem>>, %arg7: memref<1x896xf32, #tpu.memory_space<vmem>>, %arg8: memref<16x896xbf16, #tpu.memory_space<vmem>>) attributes {dimension_semantics = [#tpu.dimension_semantics<parallel>], iteration_bounds = array<i64: 1>, scalar_prefetch = 0 : i64, scratch_operands = 0 : i64, tpu.core_type = #tpu.core_type<tc>, window_params = [{transform_indices = @transform_0, window_bounds = array<i64: 16, 128>}, {pipeline_mode = #tpu.pipeline_mode<synchronous>, transform_indices = @transform_1, window_bounds = array<i64: 128, 128>}, {pipeline_mode = #tpu.pipeline_mode<synchronous>, transform_indices = @transform_2, window_bounds = array<i64: 1, 128>}, {pipeline_mode = #tpu.pipeline_mode<synchronous>, transform_indices = @transform_3, window_bounds = array<i64: 128, 256>}, {pipeline_mode = #tpu.pipeline_mode<synchronous>, transform_indices = @transform_4, window_bounds = array<i64: 1, 256>}, {pipeline_mode = #tpu.pipeline_mode<synchronous>, transform_indices = @transform_5, window_bounds = array<i64: 256, 896>}, {pipeline_mode = #tpu.pipeline_mode<synchronous>, transform_indices = @transform_6, window_bounds = array<i64: 1, 896>}, {transform_indices = @transform_7, window_bounds = array<i64: 16, 896>}]} {
    %c0 = arith.constant 0 : index
    %c0_0 = arith.constant 0 : index
    %0 = vector.load %arg1[%c0, %c0_0] : memref<16x128xbf16, #tpu.memory_space<vmem>>, vector<16x128xbf16>
    %c0_1 = arith.constant 0 : index
    %c0_2 = arith.constant 0 : index
    %1 = vector.load %arg2[%c0_1, %c0_2] : memref<128x128xbf16, #tpu.memory_space<vmem>>, vector<128x128xbf16>
    %cst = arith.constant dense<0.000000e+00> : vector<16x128xf32>
    %2 = tpu.matmul %0, %1, %cst {dimension_numbers = #tpu.dot_dimension_numbers<[1], [0], [0], [1], [0, 0, 1, 1], [], []>} : vector<16x128xbf16>, vector<128x128xbf16>, vector<16x128xf32> -> vector<16x128xf32>
    %c0_3 = arith.constant 0 : index
    %c0_4 = arith.constant 0 : index
    %3 = vector.load %arg3[%c0_3, %c0_4] : memref<1x128xf32, #tpu.memory_space<vmem>>, vector<1x128xf32>
    %4 = vector.broadcast %3 : vector<1x128xf32> to vector<16x128xf32>
    %5 = arith.addf %2, %4 : vector<16x128xf32>
    %cst_5 = arith.constant 0.000000e+00 : f32
    %6 = vector.broadcast %cst_5 : f32 to vector<16x128xf32>
    %7 = arith.cmpf ogt, %5, %6 : vector<16x128xf32>
    %cst_6 = arith.constant 2.000000e-01 : f32
    %8 = vector.broadcast %cst_6 : f32 to vector<16x128xf32>
    %9 = arith.mulf %8, %5 : vector<16x128xf32>
    %10 = arith.select %7, %5, %9 : vector<16x128xi1>, vector<16x128xf32>
    %11 = arith.truncf %10 : vector<16x128xf32> to vector<16x128xbf16>
    %c0_7 = arith.constant 0 : index
    %c0_8 = arith.constant 0 : index
    %12 = vector.load %arg4[%c0_7, %c0_8] : memref<128x256xbf16, #tpu.memory_space<vmem>>, vector<128x256xbf16>
    %cst_9 = arith.constant dense<0.000000e+00> : vector<16x256xf32>
    %13 = tpu.matmul %11, %12, %cst_9 {dimension_numbers = #tpu.dot_dimension_numbers<[1], [0], [0], [1], [0, 0, 1, 1], [], []>} : vector<16x128xbf16>, vector<128x256xbf16>, vector<16x256xf32> -> vector<16x256xf32>
    %c0_10 = arith.constant 0 : index
    %c0_11 = arith.constant 0 : index
    %14 = vector.load %arg5[%c0_10, %c0_11] : memref<1x256xf32, #tpu.memory_space<vmem>>, vector<1x256xf32>
    %15 = vector.broadcast %14 : vector<1x256xf32> to vector<16x256xf32>
    %16 = arith.addf %13, %15 : vector<16x256xf32>
    %cst_12 = arith.constant 0.000000e+00 : f32
    %17 = vector.broadcast %cst_12 : f32 to vector<16x256xf32>
    %18 = arith.cmpf ogt, %16, %17 : vector<16x256xf32>
    %cst_13 = arith.constant 2.000000e-01 : f32
    %19 = vector.broadcast %cst_13 : f32 to vector<16x256xf32>
    %20 = arith.mulf %19, %16 : vector<16x256xf32>
    %21 = arith.select %18, %16, %20 : vector<16x256xi1>, vector<16x256xf32>
    %22 = arith.truncf %21 : vector<16x256xf32> to vector<16x256xbf16>
    %c0_14 = arith.constant 0 : index
    %c0_15 = arith.constant 0 : index
    %23 = vector.load %arg6[%c0_14, %c0_15] : memref<256x896xbf16, #tpu.memory_space<vmem>>, vector<256x896xbf16>
    %cst_16 = arith.constant dense<0.000000e+00> : vector<16x896xf32>
    %24 = tpu.matmul %22, %23, %cst_16 {dimension_numbers = #tpu.dot_dimension_numbers<[1], [0], [0], [1], [0, 0, 1, 1], [], []>} : vector<16x256xbf16>, vector<256x896xbf16>, vector<16x896xf32> -> vector<16x896xf32>
    %c0_17 = arith.constant 0 : index
    %c0_18 = arith.constant 0 : index
    %25 = vector.load %arg7[%c0_17, %c0_18] : memref<1x896xf32, #tpu.memory_space<vmem>>, vector<1x896xf32>
    %26 = vector.broadcast %25 : vector<1x896xf32> to vector<16x896xf32>
    %27 = arith.addf %24, %26 : vector<16x896xf32>
    %28 = math.tanh %27 : vector<16x896xf32>
    %29 = arith.truncf %28 : vector<16x896xf32> to vector<16x896xbf16>
    %c0_19 = arith.constant 0 : index
    %c0_20 = arith.constant 0 : index
    %30 = vector.load %arg8[%c0_19, %c0_20] : memref<16x896xbf16, #tpu.memory_space<vmem>>, vector<16x896xbf16>
    tpu.vector_store %arg8[%c0_19, %c0_20], %29 {strides = array<i32>} : memref<16x896xbf16, #tpu.memory_space<vmem>>, vector<16x896xbf16>,
    return
  }
  func.func @transform_0(%arg0: i32) -> (i32, i32) {
    %c0_i32 = arith.constant 0 : i32
    %c0_i32_0 = arith.constant 0 : i32
    return %arg0, %c0_i32 : i32, i32
  }
  func.func @transform_1(%arg0: i32) -> (i32, i32) {
    %c0_i32 = arith.constant 0 : i32
    %c0_i32_0 = arith.constant 0 : i32
    %c0_i32_1 = arith.constant 0 : i32
    return %c0_i32, %c0_i32_0 : i32, i32
  }
  func.func @transform_2(%arg0: i32) -> (i32, i32) {
    %c0_i32 = arith.constant 0 : i32
    %c0_i32_0 = arith.constant 0 : i32
    %c0_i32_1 = arith.constant 0 : i32
    return %c0_i32, %c0_i32_0 : i32, i32
  }
  func.func @transform_3(%arg0: i32) -> (i32, i32) {
    %c0_i32 = arith.constant 0 : i32
    %c0_i32_0 = arith.constant 0 : i32
    %c0_i32_1 = arith.constant 0 : i32
    return %c0_i32, %c0_i32_0 : i32, i32
  }
  func.func @transform_4(%arg0: i32) -> (i32, i32) {
    %c0_i32 = arith.constant 0 : i32
    %c0_i32_0 = arith.constant 0 : i32
    %c0_i32_1 = arith.constant 0 : i32
    return %c0_i32, %c0_i32_0 : i32, i32
  }
  func.func @transform_5(%arg0: i32) -> (i32, i32) {
    %c0_i32 = arith.constant 0 : i32
    %c0_i32_0 = arith.constant 0 : i32
    %c0_i32_1 = arith.constant 0 : i32
    return %c0_i32, %c0_i32_0 : i32, i32
  }
  func.func @transform_6(%arg0: i32) -> (i32, i32) {
    %c0_i32 = arith.constant 0 : i32
    %c0_i32_0 = arith.constant 0 : i32
    %c0_i32_1 = arith.constant 0 : i32
    return %c0_i32, %c0_i32_0 : i32, i32
  }
  func.func @transform_7(%arg0: i32) -> (i32, i32) {
    %c0_i32 = arith.constant 0 : i32
    %c0_i32_0 = arith.constant 0 : i32
    return %arg0, %c0_i32 : i32, i32
  }
}

</mosaic_0001>

<bundles_post_ra>
// kernel: tpu_custom_call.1
= control target key start
LH: loop header
LB: loop body
LE: loop exit
PB: predicated region body
PF: predicated region fallthrough
CT: control target
= control target key end

     0   :  { %12 = vsyncpa [#allocation3], 0  ;;  %s2035_s0 = inlined_call_operand.hbm [shape: bf16[16,128], index: 0, kind: input, shape index: {}]   ;;  %s2036_s1 = inlined_call_operand.hbm [shape: bf16[128,128], index: 1, kind: input, shape index: {}]   ;;  %s2037_s2 = inlined_call_operand.vmem [shape: f32[1,128], index: 2, kind: input, shape index: {}]   ;;  %s2038_s3 = inlined_call_operand.hbm [shape: bf16[128,256], index: 3, kind: input, shape index: {}]   ;;  %s2039_s4 = inlined_call_operand.vmem [shape: f32[1,256], index: 4, kind: input, shape index: {}]   ;;  %s2040_s5 = inlined_call_operand.hbm [shape: bf16[256,896], index: 5, kind: input, shape index: {}]   ;;  %s2041_s6 = inlined_call_operand.vmem [shape: f32[1,896], index: 6, kind: input, shape index: {}]   ;;  %s2042_s7 = inlined_call_operand.hbm [shape: bf16[16,896], index: 7, kind: output, shape index: {}]  }
   0x1   :  { %13 = vsyncpa [#allocation6], 0 }
   0x2   :  { %14 = vsyncpa [#allocation9], 0 }
   0x3   :  { %15 = vsyncpa [#allocation4], 0  ;;  %s1919_s24 = smov [#allocation5]   ;;  %s1920_s26 = smov [#allocation2]  }
   0x4   :  { %s33_s25 = sshll.u32 %s1919_s24, 4  ;;  %s21_s27 = sshll.u32 %s1920_s26, 4  ;;  %s34_s25 = int_to_ptr.vmem [resolvable:$true] %s33_s25  ;;  %s22_s27 = int_to_ptr.vmem [resolvable:$true] %s21_s27 }
   0x5   :  { %s1819_s28 = scalar_lea.vmem %s34_s25, 1024  ;;  %p1824_p1 = scmp.lt.s32.totalorder %s34_s25, %s34_s25 }
   0x6   :  { %p1820_p0 = scmp.ne.s32.totalorder %s34_s25, %s1819_s28  ;;  %p1825_p2 = scmp.lt.s32.totalorder %s1819_s28, %s1819_s28 }
   0x8   :  { %p1826_p3 = por %p1825_p2, %p1824_p1 }
   0xa   :  { %p1827_p4 = pnand %p1826_p3, %p1820_p0 }
   0xc   :  { %1830 = shalt.err (!%p1827_p4)
}
   0xd   :  { %s1921_s29 = smov 64   ;;  %s1922_s30 = smov 4  }
   0xe   :  { %39 = dma.hbm_to_vmem [thread:$0]  %s2036_s1, 1024, %s34_s25, [#allocation6], %s1921_s29, %s1921_s29, %s1922_s30  }
   0xf   :  { %s1839_s10 = scalar_lea.vmem %s22_s27, 128  ;;  %p1844_p6 = scmp.lt.s32.totalorder %s22_s27, %s22_s27 }
  0x10   :  { %p1840_p5 = scmp.ne.s32.totalorder %s22_s27, %s1839_s10  ;;  %p1845_p7 = scmp.lt.s32.totalorder %s1839_s10, %s1839_s10 }
  0x12   :  { %p1846_p8 = por %p1845_p7, %p1844_p6 }
  0x14   :  { %p1847_p9 = pnand %p1846_p8, %p1840_p5 }
  0x16   :  { %1850 = shalt.err (!%p1847_p9)
}
  0x17   :  { %27 = dma.hbm_to_vmem [thread:$0]  %s2035_s0, 128, %s22_s27, [#allocation3], %s1921_s29, %s1921_s29, %s1922_s30  }
  0x18   :  { %s1923_s13 = smov [#allocation7]  }
  0x19   :  { %s47_s14 = sshll.u32 %s1923_s13, 4  ;;  %s48_s14 = int_to_ptr.vmem [resolvable:$true] %s47_s14 }
  0x1a   :  { %s1859_s15 = scalar_lea.vmem %s48_s14, 2048  ;;  %p1864_p11 = scmp.lt.s32.totalorder %s48_s14, %s48_s14 }
  0x1b   :  { %p1860_p10 = scmp.ne.s32.totalorder %s48_s14, %s1859_s15  ;;  %p1865_p12 = scmp.lt.s32.totalorder %s1859_s15, %s1859_s15 }
  0x1d   :  { %p1866_p13 = por %p1865_p12, %p1864_p11 }
  0x1f   :  { %p1867_p0 = pnand %p1866_p13, %p1860_p10 }
  0x21   :  { %1870 = shalt.err (!%p1867_p0)
}
  0x22   :  { %s1924_s1 = smov 128   ;;  %s1925_s16 = smov 8  }
  0x23   :  { %53 = dma.hbm_to_vmem [thread:$0]  %s2038_s3, 2048, %s48_s14, [#allocation6], %s1924_s1, %s1924_s1, %s1925_s16  }
  0x24   :  { %s1926_s19 = smov [#allocation8]  }
  0x25   :  { %s61_s20 = sshll.u32 %s1926_s19, 4  ;;  %s62_s20 = int_to_ptr.vmem [resolvable:$true] %s61_s20 }
  0x26   :  { %s1879_s0 = scalar_lea.vmem %s62_s20, 14336  ;;  %p1884_p2 = scmp.lt.s32.totalorder %s62_s20, %s62_s20 }
  0x27   :  { %p1880_p1 = scmp.ne.s32.totalorder %s62_s20, %s1879_s0  ;;  %p1885_p3 = scmp.lt.s32.totalorder %s1879_s0, %s1879_s0 }
  0x29   :  { %p1886_p4 = por %p1885_p3, %p1884_p2 }
  0x2b   :  { %p1887_p5 = pnand %p1886_p4, %p1880_p1 }
  0x2d   :  { %1890 = shalt.err (!%p1887_p5)
}
  0x2e   :  { %s1927_s21 = smov 448   ;;  %s1928_s22 = smov 28  }
  0x2f   :  { %67 = dma.hbm_to_vmem [thread:$0]  %s2040_s5, 14336, %s62_s20, [#allocation9], %s1927_s21, %s1927_s21, %s1928_s22  }
  0x30   :  { %1911 = dma.done.wait [#allocation3], 128  }
  0x31   :  { %1912 = vsyncadd [#allocation3], 4294967168 }
  0x32   :  { %1913 = dma.done.wait [#allocation6], 3072  }
  0x33   :  { %1914 = vsyncadd [#allocation6], 4294964224 }
  0x34   :  { %1915 = dma.done.wait [#allocation9], 14336  }
  0x35   :  { %1916 = vsyncadd [#allocation9], 4294952960  ;;  %v1929_v0 = vmov 0.0   ;;  %vm1930_vm0 = vmmov 0   ;;  %v1590_v1 = vld [vmem:[#allocation5 + $0x38] sm:$0xff]   ;;  %v1591_v2 = vld [vmem:[#allocation5 + $0x30] sm:$0xff]  }
  0x36   :  { %1556 = vmatprep.subr.bf16.mxu0 %v1929_v0  ;;  %1572 = vmatprep.mubr.msk.bf16.mxu0 %vm1930_vm0, %v1929_v0  ;;  %v1592_v3 = vld [vmem:[#allocation5 + $0x28] sm:$0xff]   ;;  %v1593_v4 = vld [vmem:[#allocation5 + $0x20] sm:$0xff]   ;;  %v1599_v5 = vld [vmem:[#allocation7 + $0x74] ss:$8 sps:$4 sm:$0xff]   ;;  %v1931_v26 = vmov 0  }
  0x37   :  { %1557 = vmatpush3.bf16.msra.mxu0 %v1590_v1  ;;  %v1601_v6 = vld [vmem:[#allocation7 + $0x70] ss:$8 sps:$4 sm:$0xff]   ;;  %318 = vmatprep.subr.bf16.mxu1 %v1599_v5  ;;  %v1602_v7 = vld [vmem:[#allocation7 + $0x64] ss:$8 sps:$4 sm:$0xff]   ;;  %v1604_v8 = vld [vmem:[#allocation7 + $0x60] ss:$8 sps:$4 sm:$0xff]  }
  0x38   :  { %1558 = vmatprep.subr.bf16.mxu0 %v1929_v0  ;;  %319 = vmatpush1.bf16.msra.mxu1 %v1601_v6  ;;  %v1605_v9 = vld [vmem:[#allocation7 + $0x54] ss:$8 sps:$4 sm:$0xff]   ;;  %v1607_v11 = vld [vmem:[#allocation7 + $0x50] ss:$8 sps:$4 sm:$0xff]   ;;  %v1608_v12 = vld [vmem:[#allocation7 + $0x44] ss:$8 sps:$4 sm:$0xff]  }
  0x39   :  { %320 = vmatprep.subr.bf16.mxu1 %v1602_v7  ;;  %v1594_v10 = vld [vmem:[#allocation5 + $0x18] sm:$0xff]   ;;  %v1595_v13 = vld [vmem:[#allocation5 + $0x10] sm:$0xff]   ;;  %v1610_v14 = vld [vmem:[#allocation7 + $0x40] ss:$8 sps:$4 sm:$0xff]   ;;  %350 = vmatprep.mubr.bf16.mxu1 %v1931_v26 }
  0x3a   :  { %v1611_v15 = vld [vmem:[#allocation7 + $0x34] ss:$8 sps:$4 sm:$0xff]   ;;  %v1596_v16 = vld [vmem:[#allocation5 + $0x8] sm:$0xff]   ;;  %v1613_v17 = vld [vmem:[#allocation7 + $0x30] ss:$8 sps:$4 sm:$0xff]  }
  0x3b   :  { %1559 = vmatpush3.bf16.msra.mxu0 %v1591_v2  ;;  %v1597_v18 = vld [vmem:[#allocation5] sm:$0xff]   ;;  %v1598_v19 = vld [vmem:[#allocation2] sm:$0xff]   ;;  %v1625_v28 = vld [vmem:[#allocation8 + $0x18c] ss:$28 sps:$4 sm:$0xff]  }
  0x3c   :  { %1560 = vmatprep.subr.bf16.mxu0 %v1929_v0  ;;  %321 = vmatpush1.bf16.msra.mxu1 %v1604_v8  ;;  %v1614_v20 = vld [vmem:[#allocation7 + $0x24] ss:$8 sps:$4 sm:$0xff]   ;;  %v1616_v21 = vld [vmem:[#allocation7 + $0x20] ss:$8 sps:$4 sm:$0xff]   ;;  %v1617_v22 = vld [vmem:[#allocation7 + $0x14] ss:$8 sps:$4 sm:$0xff]  }
  0x3d   :  { %322 = vmatprep.subr.bf16.mxu1 %v1605_v9  ;;  %v1619_v23 = vld [vmem:[#allocation7 + $0x10] ss:$8 sps:$4 sm:$0xff]   ;;  %v1620_v24 = vld [vmem:[#allocation7 + $0x4] ss:$8 sps:$4 sm:$0xff]   ;;  %v1622_v25 = vld [vmem:[#allocation7] ss:$8 sps:$4 sm:$0xff]  }
  0x3e   :  { %v1623_v27 = vld [vmem:[#allocation8 + $0x188] ss:$28 sps:$4 sm:$0xff]   ;;  %v1628_v29 = vld [vmem:[#allocation8 + $0x194] ss:$28 sps:$4 sm:$0xff]   ;;  %v1637_v32 = vld [vmem:[#allocation8 + $0x11c] ss:$28 sps:$4 sm:$0xff]  }
  0x3f   :  { %1561 = vmatpush3.bf16.msra.mxu0 %v1592_v3  ;;  %v1631_v30 = vld [vmem:[#allocation8 + $0x154] ss:$28 sps:$4 sm:$0xff]   ;;  %v1643_v34 = vld [vmem:[#allocation8 + $0xe4] ss:$28 sps:$4 sm:$0xff]   ;;  %v1649_v36 = vld [vmem:[#allocation8 + $0xac] ss:$28 sps:$4 sm:$0xff]  }
  0x40   :  { %1562 = vmatprep.subr.bf16.mxu0 %v1929_v0  ;;  %323 = vmatpush1.bf16.msra.mxu1 %v1607_v11  ;;  %v1629_v31 = vld [vmem:[#allocation8 + $0x150] ss:$28 sps:$4 sm:$0xff]   ;;  %v1635_v33 = vld [vmem:[#allocation8 + $0x118] ss:$28 sps:$4 sm:$0xff]   ;;  %v1641_v35 = vld [vmem:[#allocation8 + $0xe0] ss:$28 sps:$4 sm:$0xff]  }
  0x41   :  { %324 = vmatprep.subr.bf16.mxu1 %v1608_v12  ;;  %v1647_v37 = vld [vmem:[#allocation8 + $0xa8] ss:$28 sps:$4 sm:$0xff]   ;;  %v1655_v38 = vld [vmem:[#allocation8 + $0x74] ss:$28 sps:$4 sm:$0xff]   ;;  %v1661_v40 = vld [vmem:[#allocation8 + $0x3c] ss:$28 sps:$4 sm:$0xff]  }
  0x42   :  { %v1653_v39 = vld [vmem:[#allocation8 + $0x70] ss:$28 sps:$4 sm:$0xff]   ;;  %v1659_v41 = vld [vmem:[#allocation8 + $0x38] ss:$28 sps:$4 sm:$0xff]   ;;  %v1667_v42 = vld [vmem:[#allocation8 + $0x4] ss:$28 sps:$4 sm:$0xff]  }
  0x43   :  { %1563 = vmatpush3.bf16.msra.mxu0 %v1593_v4  ;;  %v1665_v43 = vld [vmem:[#allocation8] ss:$28 sps:$4 sm:$0xff]   ;;  %v1673_v44 = vld [vmem:[#allocation8 + $0x34c] ss:$28 sps:$4 sm:$0xff]   ;;  %v1679_v46 = vld [vmem:[#allocation8 + $0x314] ss:$28 sps:$4 sm:$0xff]  }
  0x44   :  { %1564 = vmatprep.subr.bf16.mxu0 %v1929_v0  ;;  %325 = vmatpush1.bf16.msra.mxu1 %v1610_v14  ;;  %v1671_v45 = vld [vmem:[#allocation8 + $0x348] ss:$28 sps:$4 sm:$0xff]   ;;  %v1677_v47 = vld [vmem:[#allocation8 + $0x310] ss:$28 sps:$4 sm:$0xff]   ;;  %v1685_v48 = vld [vmem:[#allocation8 + $0x2dc] ss:$28 sps:$4 sm:$0xff]  }
  0x45   :  { %326 = vmatprep.subr.bf16.mxu1 %v1611_v15  ;;  %v1683_v49 = vld [vmem:[#allocation8 + $0x2d8] ss:$28 sps:$4 sm:$0xff]   ;;  %v1691_v50 = vld [vmem:[#allocation8 + $0x2a4] ss:$28 sps:$4 sm:$0xff]   ;;  %v1697_v52 = vld [vmem:[#allocation8 + $0x26c] ss:$28 sps:$4 sm:$0xff]  }
  0x46   :  { %v1689_v51 = vld [vmem:[#allocation8 + $0x2a0] ss:$28 sps:$4 sm:$0xff]   ;;  %v1695_v53 = vld [vmem:[#allocation8 + $0x268] ss:$28 sps:$4 sm:$0xff]   ;;  %v1371_v54 = vld [vmem:[%s2037_s2] ss:$0 sm:$0xff] }
  0x47   :  { %1565 = vmatpush3.bf16.msra.mxu0 %v1594_v10  ;;  %v1626_v1 = vld [vmem:[#allocation8 + $0x190] ss:$28 sps:$4 sm:$0xff]   ;;  %v1634_v3 = vld [vmem:[#allocation8 + $0x15c] ss:$28 sps:$4 sm:$0xff]   ;;  %v1640_v5 = vld [vmem:[#allocation8 + $0x124] ss:$28 sps:$4 sm:$0xff]  }
  0x48   :  { %1566 = vmatprep.subr.bf16.mxu0 %v1929_v0  ;;  %327 = vmatpush1.bf16.msra.mxu1 %v1613_v17  ;;  %v1632_v4 = vld [vmem:[#allocation8 + $0x158] ss:$28 sps:$4 sm:$0xff]   ;;  %v1638_v6 = vld [vmem:[#allocation8 + $0x120] ss:$28 sps:$4 sm:$0xff]   ;;  %v1646_v7 = vld [vmem:[#allocation8 + $0xec] ss:$28 sps:$4 sm:$0xff]  }
  0x49   :  { %328 = vmatprep.subr.bf16.mxu1 %v1614_v20  ;;  %v1644_v8 = vld [vmem:[#allocation8 + $0xe8] ss:$28 sps:$4 sm:$0xff]   ;;  %v1652_v9 = vld [vmem:[#allocation8 + $0xb4] ss:$28 sps:$4 sm:$0xff]   ;;  %v1658_v11 = vld [vmem:[#allocation8 + $0x7c] ss:$28 sps:$4 sm:$0xff]  }
  0x4a   :  { %v1650_v10 = vld [vmem:[#allocation8 + $0xb0] ss:$28 sps:$4 sm:$0xff]   ;;  %v1656_v12 = vld [vmem:[#allocation8 + $0x78] ss:$28 sps:$4 sm:$0xff]   ;;  %v1662_v14 = vld [vmem:[#allocation8 + $0x40] ss:$28 sps:$4 sm:$0xff]  }
  0x4b   :  { %1567 = vmatpush3.bf16.msra.mxu0 %v1595_v13  ;;  %v1664_v13 = vld [vmem:[#allocation8 + $0x44] ss:$28 sps:$4 sm:$0xff]   ;;  %v1670_v15 = vld [vmem:[#allocation8 + $0xc] ss:$28 sps:$4 sm:$0xff]   ;;  %v1676_v17 = vld [vmem:[#allocation8 + $0x354] ss:$28 sps:$4 sm:$0xff]  }
  0x4c   :  { %1568 = vmatprep.subr.bf16.mxu0 %v1929_v0  ;;  %329 = vmatpush1.bf16.msra.mxu1 %v1616_v21  ;;  %v1680_v20 = vld [vmem:[#allocation8 + $0x318] ss:$28 sps:$4 sm:$0xff]   ;;  %v1688_v21 = vld [vmem:[#allocation8 + $0x2e4] ss:$28 sps:$4 sm:$0xff]   ;;  %v1698_v26 = vld [vmem:[#allocation8 + $0x270] ss:$28 sps:$4 sm:$0xff]  }
  0x4d   :  { %330 = vmatprep.subr.bf16.mxu1 %v1617_v22  ;;  %v1686_v22 = vld [vmem:[#allocation8 + $0x2e0] ss:$28 sps:$4 sm:$0xff]  }
  0x4f   :  { %1569 = vmatpush3.bf16.msra.mxu0 %v1596_v16  ;;  %v1668_v16 = vld [vmem:[#allocation8 + $0x8] ss:$28 sps:$4 sm:$0xff]  }
  0x50   :  { %1570 = vmatprep.subr.bf16.mxu0 %v1929_v0  ;;  %331 = vmatpush1.bf16.msra.mxu1 %v1619_v23  ;;  %v1694_v23 = vld [vmem:[#allocation8 + $0x2ac] ss:$28 sps:$4 sm:$0xff]  }
  0x51   :  { %332 = vmatprep.subr.bf16.mxu1 %v1620_v24  ;;  %v1692_v24 = vld [vmem:[#allocation8 + $0x2a8] ss:$28 sps:$4 sm:$0xff]  }
  0x53   :  { %1571 = vmatpush3.bf16.msra.mxu0 %v1597_v18  ;;  %v1674_v18 = vld [vmem:[#allocation8 + $0x350] ss:$28 sps:$4 sm:$0xff]  }
  0x54   :  { %333 = vmatpush1.bf16.msra.mxu1 %v1622_v25  ;;  %1116 = vmatprep.subr.bf16.mxu0 %v1625_v28  ;;  %v1700_v25 = vld [vmem:[#allocation8 + $0x274] ss:$28 sps:$4 sm:$0xff]   ;;  %v1706_v28 = vld [vmem:[#allocation8 + $0x23c] ss:$28 sps:$4 sm:$0xff]  }
  0x55   :  { %1159 = vmatprep.subr.bf16.mxu1 %v1628_v29  ;;  %v1701_v29 = vld [vmem:[#allocation8 + $0x230] ss:$28 sps:$4 sm:$0xff]  }
  0x56   :  { %1573 = vmatmul.mubr.bf16.vlgmr.msra.gmra.mxu0 %v1598_v19  ;;  %v1682_v19 = vld [vmem:[#allocation8 + $0x31c] ss:$28 sps:$4 sm:$0xff]  }
  0x57   :  { %1117 = vmatpush1.bf16.msra.mxu0 %v1623_v27  ;;  %v1703_v27 = vld [vmem:[#allocation8 + $0x234] ss:$28 sps:$4 sm:$0xff]  }
  0x58   :  { %1118 = vmatprep.subr.bf16.mxu0 %v1631_v30  ;;  %v1704_v30 = vld [vmem:[#allocation8 + $0x238] ss:$28 sps:$4 sm:$0xff]  }
  0x5b   :  { %1119 = vmatpush1.bf16.msra.mxu0 %v1629_v31  ;;  %v1709_v31 = vld [vmem:[#allocation8 + $0x1fc] ss:$28 sps:$4 sm:$0xff]  }
  0x5c   :  { %1120 = vmatprep.subr.bf16.mxu0 %v1637_v32  ;;  %v1712_v32 = vld [vmem:[#allocation8 + $0x204] ss:$28 sps:$4 sm:$0xff]  }
  0x5f   :  { %1121 = vmatpush1.bf16.msra.mxu0 %v1635_v33  ;;  %v1707_v33 = vld [vmem:[#allocation8 + $0x1f8] ss:$28 sps:$4 sm:$0xff]  }
  0x60   :  { %1122 = vmatprep.subr.bf16.mxu0 %v1643_v34  ;;  %v1710_v34 = vld [vmem:[#allocation8 + $0x200] ss:$28 sps:$4 sm:$0xff]  }
  0x63   :  { %1123 = vmatpush1.bf16.msra.mxu0 %v1641_v35  ;;  %v1715_v35 = vld [vmem:[#allocation8 + $0x1c4] ss:$28 sps:$4 sm:$0xff]  }
  0x64   :  { %1124 = vmatprep.subr.bf16.mxu0 %v1649_v36  ;;  %v1718_v36 = vld [vmem:[#allocation8 + $0x1cc] ss:$28 sps:$4 sm:$0xff]  }
  0x67   :  { %1125 = vmatpush1.bf16.msra.mxu0 %v1647_v37  ;;  %v1713_v37 = vld [vmem:[#allocation8 + $0x1c0] ss:$28 sps:$4 sm:$0xff]  }
  0x68   :  { %1126 = vmatprep.subr.bf16.mxu0 %v1655_v38  ;;  %v1716_v38 = vld [vmem:[#allocation8 + $0x1c8] ss:$28 sps:$4 sm:$0xff]  }
  0x6b   :  { %1127 = vmatpush1.bf16.msra.mxu0 %v1653_v39  ;;  %v1721_v39 = vld [vmem:[#allocation8 + $0x19c] ss:$28 sps:$4 sm:$0xff]  }
  0x6c   :  { %1128 = vmatprep.subr.bf16.mxu0 %v1661_v40  ;;  %v1722_v40 = vld [vmem:[#allocation8 + $0x360] ss:$28 sps:$4 sm:$0xff]  }
  0x6f   :  { %1129 = vmatpush1.bf16.msra.mxu0 %v1659_v41  ;;  %v228_v41 = vlaneseq }
  0x70   :  { %1130 = vmatprep.subr.bf16.mxu0 %v1667_v42 }
  0x71   :  { %v1991_v42 = vshrl.u32 %v228_v41, 7  ;;  %v1771_v41 = vld [vmem:[#allocation8 + $0x278] ss:$28 sps:$4 sm:$0xff]  }
  0x73   :  { %1131 = vmatpush1.bf16.msra.mxu0 %v1665_v43  ;;  %v234_v43 = vsub.s32 1, %v1991_v42 }
  0x74   :  { %1132 = vmatprep.subr.bf16.mxu0 %v1673_v44  ;;  %v230_v44 = vsub.s32 0, %v1991_v42 }
  0x77   :  { %1133 = vmatpush2.bf16.msra.mxu0 %v1671_v45  ;;  %v226_v45 = vld [vmem:[%s2039_s4] sm:$0x3] }
  0x78   :  { %1134 = vmatprep.subr.bf16.mxu0 %v1679_v46  ;;  %v235_v46 = vrot.slane %v226_v45, %v234_v43 }
  0x7b   :  { %1135 = vmatpush2.bf16.msra.mxu0 %v1677_v47  ;;  %v231_v47 = vrot.slane %v226_v45, %v230_v44  ;;  %v1776_v45 = vld [vmem:[#allocation8 + $0x244] ss:$28 sps:$4 sm:$0xff]  }
  0x7c   :  { %1136 = vmatprep.subr.bf16.mxu0 %v1685_v48 }
  0x7f   :  { %1137 = vmatpush2.bf16.msra.mxu0 %v1683_v49 }
  0x80   :  { %1138 = vmatprep.subr.bf16.mxu0 %v1691_v50 }
  0x83   :  { %1139 = vmatpush2.bf16.msra.mxu0 %v1689_v51 }
  0x84   :  { %1140 = vmatprep.subr.bf16.mxu0 %v1697_v52 }
  0x87   :  { %1141 = vmatpush2.bf16.msra.mxu0 %v1695_v53 }
  0x88   :  { %1142 = vmatprep.subr.bf16.mxu0 %v1703_v27  ;;  %v1753_v27 = vld [vmem:[#allocation8 + $0x50] ss:$28 sps:$4 sm:$0xff]  }
  0x8b   :  { %1143 = vmatpush2.bf16.msra.mxu0 %v1701_v29  ;;  %v1757_v29 = vld [vmem:[#allocation8 + $0x1d8] ss:$28 sps:$4 sm:$0xff]  }
  0x8c   :  { %1144 = vmatprep.subr.bf16.mxu0 %v1709_v31  ;;  %v1758_v31 = vld [vmem:[#allocation8 + $0x18] ss:$28 sps:$4 sm:$0xff]  }
  0x8f   :  { %1145 = vmatpush2.bf16.msra.mxu0 %v1707_v33  ;;  %v1759_v33 = vld [vmem:[#allocation8 + $0x358] ss:$28 sps:$4 sm:$0xff]  }
  0x90   :  { %1146 = vmatprep.subr.bf16.mxu0 %v1715_v35  ;;  %v1762_v35 = vld [vmem:[#allocation8 + $0x320] ss:$28 sps:$4 sm:$0xff]  }
  0x93   :  { %1147 = vmatpush2.bf16.msra.mxu0 %v1713_v37  ;;  %v1765_v37 = vld [vmem:[#allocation8 + $0x2e8] ss:$28 sps:$4 sm:$0xff]  }
  0x94   :  { %1202 = vmatprep.subr.bf16.mxu0 %v1721_v39  ;;  %v1768_v39 = vld [vmem:[#allocation8 + $0x2b0] ss:$28 sps:$4 sm:$0xff]  }
 0x116   :  { %v196_v55 = vpop.f32.mrf.mxu0 }
 0x117   :  { %v197_v56 = vadd.f32 %v1371_v54, %v196_v55 }
 0x118   :  { %v1574_v57 = vpop.f32.mrf.mxu0 }
 0x119   :  { %v205_v59 = vmul.f32 0.2, %v197_v56  ;;  %vm203_vm1 = vcmp.gt.f32.partialorder %v197_v56, 0.0 }
 0x11a   :  { %v199_v58 = vpop.f32.mrf.mxu0 }
 0x11b   :  { %v200_v60 = vadd.f32 %v1371_v54, %v199_v58  ;;  %v207_v63 = vsel %vm203_vm1, %v197_v56, %v205_v59 }
 0x11c   :  { %v1575_v61 = vpop.f32.mrf.mxu0 }
 0x11d   :  { %vm204_vm2 = vcmp.gt.f32.partialorder %v200_v60, 0.0  ;;  %v206_v62 = vmul.f32 0.2, %v200_v60 }
 0x11f   :  { %v208_v0 = vsel %vm204_vm2, %v200_v60, %v206_v62 }
 0x120   :  { %v209_v2 = vpack.c.bf16 %v208_v0, %v207_v63 }
 0x122   :  { %351 = vmatmul.mubr.bf16.vlgmr.msra.gmra.mxu1 %v209_v2  ;;  %v1723_v2 = vld [vmem:[#allocation8 + $0x1a0] ss:$28 sps:$4 sm:$0xff]  }
 0x123   :  { %1160 = vmatpush1.bf16.msra.mxu1 %v1626_v1  ;;  %v1719_v1 = vld [vmem:[#allocation8 + $0x198] ss:$28 sps:$4 sm:$0xff]  }
 0x124   :  { %1161 = vmatprep.subr.bf16.mxu1 %v1634_v3 }
 0x127   :  { %1162 = vmatpush1.bf16.msra.mxu1 %v1632_v4  ;;  %v1726_v4 = vld [vmem:[#allocation8 + $0x164] ss:$28 sps:$4 sm:$0xff]  }
 0x128   :  { %1163 = vmatprep.subr.bf16.mxu1 %v1640_v5  ;;  %v1727_v5 = vld [vmem:[#allocation8 + $0x328] ss:$28 sps:$4 sm:$0xff]  }
 0x12b   :  { %1164 = vmatpush1.bf16.msra.mxu1 %v1638_v6  ;;  %v1724_v6 = vld [vmem:[#allocation8 + $0x160] ss:$28 sps:$4 sm:$0xff]  }
 0x12c   :  { %1165 = vmatprep.subr.bf16.mxu1 %v1646_v7  ;;  %v1728_v7 = vld [vmem:[#allocation8 + $0x168] ss:$28 sps:$4 sm:$0xff]  }
 0x12f   :  { %1166 = vmatpush1.bf16.msra.mxu1 %v1644_v8  ;;  %v1731_v8 = vld [vmem:[#allocation8 + $0x12c] ss:$28 sps:$4 sm:$0xff]  }
 0x130   :  { %1167 = vmatprep.subr.bf16.mxu1 %v1652_v9  ;;  %v1732_v9 = vld [vmem:[#allocation8 + $0x2f0] ss:$28 sps:$4 sm:$0xff]  }
 0x133   :  { %1168 = vmatpush1.bf16.msra.mxu1 %v1650_v10  ;;  %v1729_v10 = vld [vmem:[#allocation8 + $0x128] ss:$28 sps:$4 sm:$0xff]  }
 0x134   :  { %1169 = vmatprep.subr.bf16.mxu1 %v1658_v11  ;;  %v1733_v11 = vld [vmem:[#allocation8 + $0x130] ss:$28 sps:$4 sm:$0xff]  }
 0x137   :  { %1170 = vmatpush1.bf16.msra.mxu1 %v1656_v12  ;;  %v1736_v12 = vld [vmem:[#allocation8 + $0xf4] ss:$28 sps:$4 sm:$0xff]  }
 0x138   :  { %1171 = vmatprep.subr.bf16.mxu1 %v1664_v13  ;;  %v1737_v13 = vld [vmem:[#allocation8 + $0x2b8] ss:$28 sps:$4 sm:$0xff]  }
 0x13b   :  { %1172 = vmatpush1.bf16.msra.mxu1 %v1662_v14  ;;  %v1734_v14 = vld [vmem:[#allocation8 + $0xf0] ss:$28 sps:$4 sm:$0xff]  }
 0x13c   :  { %1173 = vmatprep.subr.bf16.mxu1 %v1670_v15  ;;  %v1738_v15 = vld [vmem:[#allocation8 + $0xf8] ss:$28 sps:$4 sm:$0xff]  }
 0x13f   :  { %1174 = vmatpush1.bf16.msra.mxu1 %v1668_v16  ;;  %v1741_v16 = vld [vmem:[#allocation8 + $0xbc] ss:$28 sps:$4 sm:$0xff]  }
 0x140   :  { %1175 = vmatprep.subr.bf16.mxu1 %v1676_v17  ;;  %v1742_v17 = vld [vmem:[#allocation8 + $0x280] ss:$28 sps:$4 sm:$0xff]  }
 0x143   :  { %1176 = vmatpush2.bf16.msra.mxu1 %v1674_v18  ;;  %v1739_v18 = vld [vmem:[#allocation8 + $0xb8] ss:$28 sps:$4 sm:$0xff]  }
 0x144   :  { %1177 = vmatprep.subr.bf16.mxu1 %v1682_v19  ;;  %v1743_v19 = vld [vmem:[#allocation8 + $0xc0] ss:$28 sps:$4 sm:$0xff]  }
 0x147   :  { %1178 = vmatpush2.bf16.msra.mxu1 %v1680_v20  ;;  %v1746_v20 = vld [vmem:[#allocation8 + $0x84] ss:$28 sps:$4 sm:$0xff]  }
 0x148   :  { %1179 = vmatprep.subr.bf16.mxu1 %v1688_v21  ;;  %v1747_v21 = vld [vmem:[#allocation8 + $0x248] ss:$28 sps:$4 sm:$0xff]  }
 0x14b   :  { %1180 = vmatpush2.bf16.msra.mxu1 %v1686_v22  ;;  %v1744_v22 = vld [vmem:[#allocation8 + $0x80] ss:$28 sps:$4 sm:$0xff]  }
 0x14c   :  { %1181 = vmatprep.subr.bf16.mxu1 %v1694_v23  ;;  %v1748_v23 = vld [vmem:[#allocation8 + $0x88] ss:$28 sps:$4 sm:$0xff]  }
 0x14f   :  { %1182 = vmatpush2.bf16.msra.mxu1 %v1692_v24  ;;  %v1751_v24 = vld [vmem:[#allocation8 + $0x4c] ss:$28 sps:$4 sm:$0xff]  }
 0x150   :  { %1183 = vmatprep.subr.bf16.mxu1 %v1700_v25  ;;  %v1752_v25 = vld [vmem:[#allocation8 + $0x210] ss:$28 sps:$4 sm:$0xff]  }
 0x153   :  { %1184 = vmatpush2.bf16.msra.mxu1 %v1698_v26  ;;  %v1749_v26 = vld [vmem:[#allocation8 + $0x48] ss:$28 sps:$4 sm:$0xff]  }
 0x154   :  { %1185 = vmatprep.subr.bf16.mxu1 %v1706_v28  ;;  %v1756_v28 = vld [vmem:[#allocation8 + $0x14] ss:$28 sps:$4 sm:$0xff]  }
 0x157   :  { %1186 = vmatpush2.bf16.msra.mxu1 %v1704_v30  ;;  %v1754_v30 = vld [vmem:[#allocation8 + $0x10] ss:$28 sps:$4 sm:$0xff]  }
 0x158   :  { %1187 = vmatprep.subr.bf16.mxu1 %v1712_v32  ;;  %v1761_v32 = vld [vmem:[#allocation8 + $0x35c] ss:$28 sps:$4 sm:$0xff]  }
 0x15b   :  { %1188 = vmatpush2.bf16.msra.mxu1 %v1710_v34  ;;  %v1764_v34 = vld [vmem:[#allocation8 + $0x324] ss:$28 sps:$4 sm:$0xff]  }
 0x15c   :  { %1189 = vmatprep.subr.bf16.mxu1 %v1718_v36  ;;  %v1767_v36 = vld [vmem:[#allocation8 + $0x2ec] ss:$28 sps:$4 sm:$0xff]  }
 0x15f   :  { %1190 = vmatpush2.bf16.msra.mxu1 %v1716_v38  ;;  %v1770_v38 = vld [vmem:[#allocation8 + $0x2b4] ss:$28 sps:$4 sm:$0xff]  }
 0x160   :  { %1534 = vmatprep.subr.bf16.mxu1 %v1722_v40  ;;  %v1773_v40 = vld [vmem:[#allocation8 + $0x27c] ss:$28 sps:$4 sm:$0xff]  }
 0x1e2   :  { %v352_v48 = vpop.f32.mrf.mxu1 }
 0x1e3   :  { %v353_v51 = vadd.f32 %v352_v48, %v231_v47  ;;  %v1777_v48 = vld [vmem:[#allocation8 + $0x208] ss:$28 sps:$4 sm:$0xff]  }
 0x1e4   :  { %v354_v49 = vpop.f32.mrf.mxu1 }
 0x1e5   :  { %v355_v50 = vadd.f32 %v354_v49, %v235_v46  ;;  %v365_v58 = vmul.f32 0.2, %v353_v51  ;;  %vm361_vm5 = vcmp.gt.f32.partialorder %v353_v51, 0.0  ;;  %v1782_v49 = vld [vmem:[#allocation8 + $0x1d4] ss:$28 sps:$4 sm:$0xff]  }
 0x1e6   :  { %v356_v52 = vpop.f32.mrf.mxu1 }
 0x1e7   :  { %v357_v53 = vadd.f32 %v356_v52, %v231_v47  ;;  %v366_v55 = vmul.f32 0.2, %v355_v50  ;;  %vm362_vm4 = vcmp.gt.f32.partialorder %v355_v50, 0.0  ;;  %v369_v63 = vsel %vm361_vm5, %v353_v51, %v365_v58  ;;  %v1779_v47 = vld [vmem:[#allocation8 + $0x20c] ss:$28 sps:$4 sm:$0xff]   ;;  %v2012_v52 = vld [vmem:[%s2041_s6] sm:$0xff] }
 0x1e8   :  { %v358_v54 = vpop.f32.mrf.mxu1  ;;  %v515_v51 = vsub.s32 2, %v1991_v42  ;;  %s1932_s6 = smov [#allocation10]  }
 0x1e9   :  { %vm363_vm3 = vcmp.gt.f32.partialorder %v357_v53, 0.0  ;;  %v367_v56 = vmul.f32 0.2, %v357_v53  ;;  %v359_v57 = vadd.f32 %v358_v54, %v235_v46  ;;  %v370_v61 = vsel %vm362_vm4, %v355_v50, %v366_v55  ;;  %v1774_v46 = vld [vmem:[#allocation8 + $0x240] ss:$28 sps:$4 sm:$0xff]   ;;  %s1357_s27 = sshll.u32 %s1932_s6, 4  ;;  %s1358_s27 = int_to_ptr.vmem [resolvable:$true] %s1357_s27 }
 0x1ea   :  { %v1780_v50 = vld [vmem:[#allocation8 + $0x1d0] ss:$28 sps:$4 sm:$0xff]   ;;  %v508_v54 = vrot.slane %v2012_v52, %v230_v44  ;;  %v516_v55 = vrot.slane %v2012_v52, %v515_v51  ;;  %s1891_s28 = scalar_lea.vmem %s1358_s27, 896  ;;  %p1896_p7 = scmp.lt.s32.totalorder %s1358_s27, %s1358_s27 }
 0x1eb   :  { %vm364_vm6 = vcmp.gt.f32.partialorder %v359_v57, 0.0  ;;  %v368_v59 = vmul.f32 0.2, %v359_v57  ;;  %v371_v60 = vsel %vm363_vm3, %v357_v53, %v367_v56  ;;  %v519_v53 = vsub.s32 3, %v1991_v42  ;;  %p1892_p6 = scmp.ne.s32.totalorder %s1358_s27, %s1891_s28  ;;  %p1897_p8 = scmp.lt.s32.totalorder %s1891_s28, %s1891_s28 }
 0x1ec   :  { %v2002_v3 = vpack.c.bf16 %v371_v60, %v369_v63  ;;  %v512_v56 = vrot.slane %v2012_v52, %v234_v43 }
 0x1ed   :  { %v372_v62 = vsel %vm364_vm6, %v359_v57, %v368_v59  ;;  %v520_v57 = vrot.slane %v2012_v52, %v519_v53  ;;  %p1898_p9 = por %p1897_p8, %p1896_p7 }
 0x1ee   :  { %v374_v0 = vpack.c.bf16 %v372_v62, %v370_v61 }
 0x1ef   :  { %p1899_p10 = pnand %p1898_p9, %p1892_p6 }
 0x1f0   :  { %1148 = vmatprep.mubr.bf16.mxu0 %v374_v0  ;;  %1191 = vmatprep.mubr.bf16.mxu1 %v374_v0 }
 0x1f1   :  { %1149 = vmatmul.mubr.bf16.vlgmr.msra.gmra.mxu0 %v2002_v3  ;;  %1192 = vmatmul.mubr.bf16.vlgmr.msra.gmra.mxu1 %v2002_v3 }
 0x1f2   :  { %1203 = vmatpush1.bf16.msra.mxu0 %v1719_v1  ;;  %1535 = vmatpush3.bf16.msra.mxu1 %v1723_v2 }
 0x1f3   :  { %1234 = vmatprep.mubr.bf16.mxu0 %v374_v0  ;;  %1277 = vmatprep.mubr.bf16.mxu1 %v374_v0 }
 0x1f4   :  { %1204 = vmatprep.subr.bf16.mxu0 %v1726_v4  ;;  %1536 = vmatprep.subr.bf16.mxu1 %v1727_v5 }
 0x1f6   :  { %1205 = vmatpush1.bf16.msra.mxu0 %v1724_v6  ;;  %1537 = vmatpush3.bf16.msra.mxu1 %v1728_v7 }
 0x1f7   :  { %1206 = vmatprep.subr.bf16.mxu0 %v1731_v8  ;;  %1538 = vmatprep.subr.bf16.mxu1 %v1732_v9 }
 0x1fa   :  { %1207 = vmatpush1.bf16.msra.mxu0 %v1729_v10  ;;  %1539 = vmatpush3.bf16.msra.mxu1 %v1733_v11 }
 0x1fb   :  { %1208 = vmatprep.subr.bf16.mxu0 %v1736_v12  ;;  %1540 = vmatprep.subr.bf16.mxu1 %v1737_v13 }
 0x1fe   :  { %1209 = vmatpush1.bf16.msra.mxu0 %v1734_v14  ;;  %1541 = vmatpush3.bf16.msra.mxu1 %v1738_v15 }
 0x1ff   :  { %1210 = vmatprep.subr.bf16.mxu0 %v1741_v16  ;;  %1542 = vmatprep.subr.bf16.mxu1 %v1742_v17 }
 0x202   :  { %1211 = vmatpush1.bf16.msra.mxu0 %v1739_v18  ;;  %1543 = vmatpush3.bf16.msra.mxu1 %v1743_v19 }
 0x203   :  { %1212 = vmatprep.subr.bf16.mxu0 %v1746_v20  ;;  %1544 = vmatprep.subr.bf16.mxu1 %v1747_v21  ;;  %v531_v20 = vsub.s32 6, %v1991_v42 }
 0x206   :  { %1213 = vmatpush1.bf16.msra.mxu0 %v1744_v22  ;;  %1545 = vmatpush3.bf16.msra.mxu1 %v1748_v23  ;;  %v532_v22 = vrot.slane %v2012_v52, %v531_v20 }
 0x207   :  { %1214 = vmatprep.subr.bf16.mxu0 %v1751_v24  ;;  %1546 = vmatprep.subr.bf16.mxu1 %v1752_v25 }
 0x20a   :  { %1215 = vmatpush1.bf16.msra.mxu0 %v1749_v26  ;;  %1547 = vmatpush3.bf16.msra.mxu1 %v1753_v27 }
 0x20b   :  { %1216 = vmatprep.subr.bf16.mxu0 %v1756_v28  ;;  %1548 = vmatprep.subr.bf16.mxu1 %v1757_v29 }
 0x20e   :  { %1217 = vmatpush1.bf16.msra.mxu0 %v1754_v30  ;;  %1549 = vmatpush3.bf16.msra.mxu1 %v1758_v31 }
 0x20f   :  { %1218 = vmatprep.subr.bf16.mxu0 %v1761_v32 }
 0x211   :  { %1278 = vmatmul.mubr.bf16.vlgmr.msra.gmra.mxu1 %v2002_v3 }
 0x212   :  { %1219 = vmatpush2.bf16.msra.mxu0 %v1759_v33 }
 0x213   :  { %1220 = vmatprep.subr.bf16.mxu0 %v1764_v34  ;;  %v523_v34 = vsub.s32 4, %v1991_v42 }
 0x216   :  { %1221 = vmatpush2.bf16.msra.mxu0 %v1762_v35  ;;  %v527_v35 = vsub.s32 5, %v1991_v42 }
 0x217   :  { %1222 = vmatprep.subr.bf16.mxu0 %v1767_v36  ;;  %v524_v36 = vrot.slane %v2012_v52, %v523_v34 }
 0x21a   :  { %1223 = vmatpush2.bf16.msra.mxu0 %v1765_v37  ;;  %v528_v37 = vrot.slane %v2012_v52, %v527_v35 }
 0x21b   :  { %1224 = vmatprep.subr.bf16.mxu0 %v1770_v38 }
 0x21e   :  { %1225 = vmatpush2.bf16.msra.mxu0 %v1768_v39 }
 0x21f   :  { %1226 = vmatprep.subr.bf16.mxu0 %v1773_v40 }
 0x222   :  { %1227 = vmatpush2.bf16.msra.mxu0 %v1771_v41 }
 0x223   :  { %1228 = vmatprep.subr.bf16.mxu0 %v1776_v45 }
 0x226   :  { %1229 = vmatpush2.bf16.msra.mxu0 %v1774_v46 }
 0x227   :  { %1230 = vmatprep.subr.bf16.mxu0 %v1779_v47 }
 0x22a   :  { %1231 = vmatpush2.bf16.msra.mxu0 %v1777_v48 }
 0x22b   :  { %1232 = vmatprep.subr.bf16.mxu0 %v1782_v49 }
 0x22e   :  { %1233 = vmatpush2.bf16.msra.mxu0 %v1780_v50 }
 0x231   :  { %1235 = vmatmul.mubr.bf16.vlgmr.msra.gmra.mxu0 %v2002_v3 }
 0x2b1   :  { %v1150_v58 = vpop.f32.mrf.mxu0  ;;  %v1193_v59 = vpop.f32.mrf.mxu1 }
 0x2b2   :  { %v1151_v60 = vadd.f32 %v1150_v58, %v508_v54  ;;  %v1194_v61 = vadd.f32 %v1193_v59, %v516_v55 }
 0x2b3   :  { %v1152_v62 = vpop.f32.mrf.mxu0  ;;  %v1195_v63 = vpop.f32.mrf.mxu1 }
 0x2b4   :  { %1783 = vtanh.f32 %v1151_v60  ;;  %v1153_v0 = vadd.f32 %v1152_v62, %v512_v56  ;;  %v1196_v1 = vadd.f32 %v1195_v63, %v520_v57 }
 0x2b5   :  { %1785 = vtanh.f32 %v1194_v61  ;;  %v1154_v2 = vpop.f32.mrf.mxu0  ;;  %v1197_v44 = vpop.f32.mrf.mxu1 }
 0x2b6   :  { %1787 = vtanh.f32 %v1153_v0  ;;  %v1155_v3 = vadd.f32 %v1154_v2, %v508_v54  ;;  %v1198_v4 = vadd.f32 %v1197_v44, %v516_v55 }
 0x2b7   :  { %1789 = vtanh.f32 %v1196_v1  ;;  %v1156_v5 = vpop.f32.mrf.mxu0  ;;  %v1199_v43 = vpop.f32.mrf.mxu1 }
 0x2b8   :  { %1791 = vtanh.f32 %v1155_v3  ;;  %v1157_v6 = vadd.f32 %v1156_v5, %v512_v56  ;;  %v1200_v7 = vadd.f32 %v1199_v43, %v520_v57 }
 0x2b9   :  { %1793 = vtanh.f32 %v1198_v4 }
 0x2ba   :  { %1795 = vtanh.f32 %v1157_v6 }
 0x2bb   :  { %1797 = vtanh.f32 %v1200_v7 }
 0x2c1   :  { %v1784_v8 = vpop.eup %1783 }
 0x2c2   :  { %v1786_v9 = vpop.eup %1785 }
 0x2c3   :  { %v1788_v10 = vpop.eup %1787 }
 0x2c4   :  { %v1790_v11 = vpop.eup %1789  ;;  %v1517_v12 = vpack.c.bf16 %v1788_v10, %v1784_v8 }
 0x2c5   :  { %v1792_v13 = vpop.eup %1791  ;;  %v1518_v14 = vpack.c.bf16 %v1790_v11, %v1786_v9 }
 0x2c6   :  { %v1794_v15 = vpop.eup %1793  ;;  %1344 = vst [vmem:[#allocation10] sm:$0xff] %v1517_v12 }
 0x2c7   :  { %v1796_v16 = vpop.eup %1795  ;;  %1345 = vst [vmem:[#allocation10 + $0x8] sm:$0xff] %v1518_v14 }
 0x2c8   :  { %v1798_v17 = vpop.eup %1797  ;;  %v1521_v18 = vpack.c.bf16 %v1796_v16, %v1792_v13 }
 0x2c9   :  { %v1522_v19 = vpack.c.bf16 %v1798_v17, %v1794_v15 }
 0x2ca   :  { %1348 = vst [vmem:[#allocation10 + $0x1c] sm:$0xff] %v1521_v18 }
 0x2cb   :  { %1349 = vst [vmem:[#allocation10 + $0x24] sm:$0xff] %v1522_v19 }
 0x2d1   :  { %v1550_v21 = vpop.f32.mrf.mxu1 }
 0x2d3   :  { %v1551_v23 = vpop.f32.mrf.mxu1 }
 0x2d4   :  { %v1552_v24 = vadd.f32 %v1551_v23, %v1550_v21 }
 0x2d5   :  { %v1553_v25 = vpop.f32.mrf.mxu1 }
 0x2d6   :  { %v1280_v26 = vadd.f32 %v1552_v24, %v532_v22 }
 0x2d7   :  { %v1554_v27 = vpop.f32.mrf.mxu1 }
 0x2d8   :  { %1799 = vtanh.f32 %v1280_v26  ;;  %v1555_v28 = vadd.f32 %v1554_v27, %v1553_v25 }
 0x2da   :  { %v1283_v29 = vadd.f32 %v1555_v28, %v532_v22 }
 0x2dc   :  { %1801 = vtanh.f32 %v1283_v29 }
 0x2e5   :  { %v1800_v30 = vpop.eup %1799 }
 0x2e6   :  { %v1520_v31 = vpack.c.bf16 %v1800_v30, %v1800_v30 }
 0x2e8   :  { %1347 = vst [vmem:[#allocation10 + $0x18] sm:$0xf] %v1520_v31 }
 0x2e9   :  { %v1802_v32 = vpop.eup %1801 }
 0x2ea   :  { %v1524_v33 = vpack.c.bf16 %v1802_v32, %v1802_v32 }
 0x2ec   :  { %1351 = vst [vmem:[#allocation10 + $0x34] sm:$0xf] %v1524_v33 }
 0x2f1   :  { %v1236_v38 = vpop.f32.mrf.mxu0 }
 0x2f2   :  { %v1237_v39 = vadd.f32 %v1236_v38, %v524_v36 }
 0x2f3   :  { %v1238_v40 = vpop.f32.mrf.mxu0 }
 0x2f4   :  { %v1239_v41 = vadd.f32 %v1238_v40, %v528_v37  ;;  %1803 = vtanh.f32 %v1237_v39 }
 0x2f5   :  { %v1240_v45 = vpop.f32.mrf.mxu0 }
 0x2f6   :  { %1805 = vtanh.f32 %v1239_v41  ;;  %v1241_v46 = vadd.f32 %v1240_v45, %v524_v36 }
 0x2f7   :  { %v1242_v47 = vpop.f32.mrf.mxu0 }
 0x2f8   :  { %v1243_v48 = vadd.f32 %v1242_v47, %v528_v37  ;;  %1807 = vtanh.f32 %v1241_v46 }
 0x2fa   :  { %1809 = vtanh.f32 %v1243_v48 }
 0x301   :  { %v1804_v49 = vpop.eup %1803 }
 0x303   :  { %v1806_v50 = vpop.eup %1805 }
 0x304   :  { %v1519_v51 = vpack.c.bf16 %v1806_v50, %v1804_v49 }
 0x305   :  { %v1808_v42 = vpop.eup %1807 }
 0x306   :  { %1346 = vst [vmem:[#allocation10 + $0x10] sm:$0xff] %v1519_v51 }
 0x307   :  { %v1810_v52 = vpop.eup %1809 }
 0x308   :  { %v1523_v53 = vpack.c.bf16 %v1810_v52, %v1808_v42 }
 0x30a   :  { %1350 = vst [vmem:[#allocation10 + $0x2c] sm:$0xff] %v1523_v53 }
 0x30b   :  { %1902 = shalt.err (!%p1899_p10)
}
 0x30c   :  { %1363 = dma.vmem_to_hbm [thread:$0]  %s1358_s27, 896, %s2042_s7, [#allocation4], %s1927_s21, %s1927_s21, %s1928_s22  }
 0x30d   :  { %1917 = dma.done.wait [#allocation4], 896  }
 0x30e   :  { %1918 = vsyncadd [#allocation4], 4294966400 }
 0x30f   :  { %1367 = vsyncpa [#allocation3], 1 }
 0x310   :  { %1368 = vsyncpa [#allocation6], 1 }
 0x311   :  { %1369 = vsyncpa [#allocation9], 1 }
 0x312   :  { %1370 = vsyncpa [#allocation4], 1 }

</bundles_post_ra>
